<compile_context>
chip_gen: v7x
topology: tpu7x:2x2x1
jax: 0.10.0
libtpu: 0.0.40
codegen_flags: <defaults>
</compile_context>

<pallas_src>
import jax
import jax.numpy as jnp
from jax.experimental import pallas as pl
from jax.experimental.pallas import tpu as pltpu

_TARGET_BLOCK_BYTES = 8 * 1024 * 1024     # ~8 MiB per block
_VMEM_LIMIT_BYTES = 48 * 1024 * 1024      # 2 x 2 x 8 MiB pipelined + headroom
_LANES = (1024, 512, 256, 128)
_CORE_PARALLEL = getattr(pltpu, "CORE_PARALLEL", None)


def _h_swish_kernel(x_ref, o_ref):
    x = x_ref[...]
    # bf16 VPU math is fine on v6e/v7x; anything else computes in f32
    # (mem-bound kernel, the cast is free).
    if jnp.dtype(x.dtype) in (jnp.dtype(jnp.float32), jnp.dtype(jnp.bfloat16)):
        xc = x
    else:
        xc = x.astype(jnp.float32)
    # h_sigmoid(x) = relu6(x + 3) / 6 ; multiply by 1/6 instead of dividing.
    hs = jnp.clip(xc + 3.0, 0.0, 6.0) * jnp.asarray(1.0 / 6.0, dtype=xc.dtype)
    o_ref[...] = (xc * hs).astype(o_ref.dtype)


def _tensorcores_per_device() -> int:
    """Best-effort TensorCores-per-chip count (v7x has 2, v5e/v6e have 1)."""
    try:
        kind = jax.devices()[0].device_kind.lower()
        if "v7" in kind:
            return 2
    except Exception:
        pass
    return 1


def _h_swish_aligned(flat: jax.Array, donate: bool) -> jax.Array:
    """Run the kernel on a 1-D array whose length is a multiple of sub*128."""
    n = flat.shape[0]
    dtype = flat.dtype
    itemsize = jnp.dtype(dtype).itemsize
    sub = max(8, 32 // itemsize)          # native sublane tiling per dtype

    lane = 128
    for cand in _LANES:                   # widest lane-dense last dim
        if n % (sub * cand) == 0:
            lane = cand
            break
    rows = n // lane
    x2d = flat.reshape(rows, lane)

    # Largest block that keeps the pipelined footprint under the VMEM limit.
    block_rows = max(sub, (_TARGET_BLOCK_BYTES // (itemsize * lane)) // sub * sub)
    block_rows = min(block_rows, rows)

    # v7x only: give each TensorCore its own slice of the row axis.
    cores = _tensorcores_per_device()
    if cores >= 2 and rows >= cores * sub:
        per_core = -(-rows // cores)          # ceil(rows / cores)
        per_core = -(-per_core // sub) * sub  # round up to sublane multiple
        block_rows = min(block_rows, per_core)

    grid = (pl.cdiv(rows, block_rows),)
    use_core_parallel = (
        cores >= 2
        and _CORE_PARALLEL is not None
        and rows % block_rows == 0            # keep every block full-size
        and grid[0] >= cores
    )

    def call(semantics):
        return pl.pallas_call(
            _h_swish_kernel,
            out_shape=jax.ShapeDtypeStruct((rows, lane), dtype),
            grid_spec=pltpu.PrefetchScalarGridSpec(
                num_scalar_prefetch=0,
                grid=grid,
                in_specs=[pl.BlockSpec((block_rows, lane), lambda i: (i, 0))],
                out_specs=pl.BlockSpec((block_rows, lane), lambda i: (i, 0)),
            ),
            compiler_params=pltpu.CompilerParams(
                dimension_semantics=semantics,
                vmem_limit_bytes=_VMEM_LIMIT_BYTES,
            ),
            # Alias only when the caller explicitly donates the buffer;
            # otherwise XLA would insert a defensive full copy.
            input_output_aliases=({0: 0} if donate else {}),
            cost_estimate=pl.CostEstimate(
                flops=5 * n,
                transcendentals=0,
                bytes_accessed=2 * n * itemsize,
            ),
        )(x2d)

    if use_core_parallel:
        try:
            return call((_CORE_PARALLEL,))
        except Exception:
            pass  # fall back to the single-core schedule below
    return call(("arbitrary",))


def _h_swish_jnp(x: jax.Array) -> jax.Array:
    """Plain-jnp h_swish, used only for the tiny (< sub*128 element) ragged tail."""
    xf = x.astype(jnp.float32)
    return (xf * (jnp.clip(xf + 3.0, 0.0, 6.0) * (1.0 / 6.0))).astype(x.dtype)


def h_swish(x: jax.Array, donate: bool = False) -> jax.Array:
    """Elementwise h_swish on an arbitrary-shaped array via a Pallas TPU kernel."""
    orig_shape = x.shape
    n = x.size
    if n == 0:
        return x
    itemsize = jnp.dtype(x.dtype).itemsize
    sub = max(8, 32 // itemsize)
    chunk = sub * 128                      # one minimal (sub, 128) tile
    flat = x.reshape(-1)

    if n % chunk == 0:
        # Zero-copy aligned path (typical activation sizes).
        return _h_swish_aligned(flat, donate=donate).reshape(orig_shape)

    prefix = (n // chunk) * chunk
    if prefix == 0:
        # Smaller than one tile: pad to a single (sub, 128) block (negligible).
        padded = jnp.pad(flat, (0, chunk - n))
        out = _h_swish_aligned(padded, donate=False)
        return out.reshape(-1)[:n].reshape(orig_shape)

    # Ragged: kernel on the aligned prefix, tiny tail in plain jnp (no
    # full-array pad + slice passes over HBM).
    head = _h_swish_aligned(flat[:prefix], donate=False).reshape(-1)
    tail = _h_swish_jnp(flat[prefix:])
    return jnp.concatenate([head, tail]).reshape(orig_shape)


def h_swish_ref(x: jax.Array) -> jax.Array:
    return x * (jnp.clip(x + 3.0, 0.0, 6.0) / 6.0)


if __name__ == "__main__":
    key = jax.random.PRNGKey(0)

    # NCHW activation, same as the PyTorch module would see (aligned path).
    x = jax.random.normal(key, (2, 4, 16, 16), dtype=jnp.float32) * 4.0
    y = jax.block_until_ready(h_swish(x))
    assert y.shape == x.shape and y.dtype == x.dtype
    assert jnp.allclose(y, h_swish_ref(x), atol=1e-5, rtol=1e-5), "mismatch (aligned)"

    # Ragged input smaller than one tile -> single padded (8,128) block.
    x2 = jax.random.normal(jax.random.PRNGKey(0), (2, 3, 7, 5), dtype=jnp.float32) * 4.0
    y2 = jax.block_until_ready(h_swish(x2))
    assert y2.shape == x2.shape and y2.dtype == x2.dtype
    assert jnp.allclose(y2, h_swish_ref(x2), atol=1e-5, rtol=1e-5), "mismatch (tiny ragged)"

    # Ragged input with an aligned prefix + small jnp tail.
    x3 = jax.random.normal(jax.random.PRNGKey(1), (3, 5, 9, 11), dtype=jnp.float32) * 4.0
    y3 = jax.block_until_ready(h_swish(x3))
    assert y3.shape == x3.shape and y3.dtype == x3.dtype
    assert jnp.allclose(y3, h_swish_ref(x3), atol=1e-5, rtol=1e-5), "mismatch (prefix+tail)"

    print("KERNEL_OK")
</pallas_src>

<mosaic_0001>
module attributes {stable_mosaic.version = 11 : i64} {
  func.func @_h_swish_kernel(%arg0: i32, %arg1: memref<8x256xf32, #tpu.memory_space<vmem>>, %arg2: memref<8x256xf32, #tpu.memory_space<vmem>>) attributes {dimension_semantics = [#tpu.dimension_semantics<arbitrary>], iteration_bounds = array<i64: 1>, scalar_prefetch = 0 : i64, scratch_operands = 0 : i64, tpu.core_type = #tpu.core_type<tc>, window_params = [{transform_indices = @transform_0, window_bounds = array<i64: 8, 256>}, {transform_indices = @transform_1, window_bounds = array<i64: 8, 256>}]} {
    %c0 = arith.constant 0 : index
    %c0_0 = arith.constant 0 : index
    %0 = vector.load %arg1[%c0, %c0_0] : memref<8x256xf32, #tpu.memory_space<vmem>>, vector<8x256xf32>
    %cst = arith.constant 3.000000e+00 : f32
    %1 = vector.broadcast %cst : f32 to vector<8x256xf32>
    %2 = arith.addf %0, %1 : vector<8x256xf32>
    %cst_1 = arith.constant 0.000000e+00 : f32
    %cst_2 = arith.constant 6.000000e+00 : f32
    %3 = vector.broadcast %cst_1 : f32 to vector<8x256xf32>
    %4 = arith.maximumf %3, %2 : vector<8x256xf32>
    %5 = vector.broadcast %cst_2 : f32 to vector<8x256xf32>
    %6 = arith.minimumf %5, %4 : vector<8x256xf32>
    %cst_3 = arith.constant 0.166666672 : f32
    %7 = vector.broadcast %cst_3 : f32 to vector<8x256xf32>
    %8 = arith.mulf %6, %7 : vector<8x256xf32>
    %9 = arith.mulf %0, %8 : vector<8x256xf32>
    %c0_4 = arith.constant 0 : index
    %c0_5 = arith.constant 0 : index
    %10 = vector.load %arg2[%c0_4, %c0_5] : memref<8x256xf32, #tpu.memory_space<vmem>>, vector<8x256xf32>
    tpu.vector_store %arg2[%c0_4, %c0_5], %9 {strides = array<i32>} : memref<8x256xf32, #tpu.memory_space<vmem>>, vector<8x256xf32>,
    return
  }
  func.func @transform_0(%arg0: i32) -> (i32, i32) {
    %c0_i32 = arith.constant 0 : i32
    %c0_i32_0 = arith.constant 0 : i32
    return %arg0, %c0_i32 : i32, i32
  }
  func.func @transform_1(%arg0: i32) -> (i32, i32) {
    %c0_i32 = arith.constant 0 : i32
    %c0_i32_0 = arith.constant 0 : i32
    return %arg0, %c0_i32 : i32, i32
  }
}

</mosaic_0001>

<bundles_post_ra>
// kernel: tpu_custom_call.1
= control target key start
LH: loop header
LB: loop body
LE: loop exit
PB: predicated region body
PF: predicated region fallthrough
CT: control target
= control target key end

     0   :  { %6 = vsyncpa [#allocation3], 0  ;;  %s136_s0 = inlined_call_operand.hbm [shape: f32[8,256], index: 0, kind: input, shape index: {}]   ;;  %s137_s1 = inlined_call_operand.hbm [shape: f32[8,256], index: 1, kind: output, shape index: {}]  }
   0x1   :  { %7 = vsyncpa [#allocation4], 0  ;;  %s100_s6 = smov [#allocation2]   ;;  %s52_s10 = scalar_lea.hbm %s136_s0, 256 }
   0x2   :  { %s14_s7 = sshll.u32 %s100_s6, 4  ;;  %p53_p0 = scmp.ne.s32.totalorder %s136_s0, %s52_s10  ;;  %s15_s7 = int_to_ptr.vmem [resolvable:$true] %s14_s7 }
   0x3   :  { %p56_p1 = scmp.lt.u32.totalorder %s52_s10, %s136_s0 }
   0x5   :  { %p58_p2 = pnand %p56_p1, %p53_p0 }
   0x7   :  { %61 = shalt.err (!%p58_p2)
}
   0x8   :  { %s62_s15 = scalar_lea.vmem %s15_s7, 256  ;;  %p67_p4 = scmp.lt.s32.totalorder %s15_s7, %s15_s7 }
   0x9   :  { %p63_p3 = scmp.ne.s32.totalorder %s15_s7, %s62_s15  ;;  %p68_p5 = scmp.lt.s32.totalorder %s62_s15, %s62_s15 }
   0xb   :  { %p69_p6 = por %p68_p5, %p67_p4 }
   0xd   :  { %p70_p7 = pnand %p69_p6, %p63_p3 }
   0xf   :  { %73 = shalt.err (!%p70_p7)
}
  0x10   :  { %17 = dma.hbm_to_vmem [thread:$0]  %s136_s0, 256, %s15_s7, [#allocation3]  }
  0x11   :  { %96 = dma.done.wait [#allocation3], 256  }
  0x12   :  { %97 = vsyncadd [#allocation3], 4294967040  ;;  %v21_v0 = vld [vmem:[#allocation2] sm:$0xff]  ;;  %v22_v1 = vld [vmem:[#allocation2 + $0x8] sm:$0xff]  ;;  %s101_s18 = smov [#allocation5]  }
  0x13   :  { %v23_v2 = vadd.f32 3.0, %v21_v0  ;;  %v24_v3 = vadd.f32 3.0, %v22_v1  ;;  %s41_s19 = sshll.u32 %s101_s18, 4  ;;  %s42_s19 = int_to_ptr.vmem [resolvable:$true] %s41_s19 }
  0x14   :  { %s74_s0 = scalar_lea.vmem %s42_s19, 256  ;;  %p79_p9 = scmp.lt.s32.totalorder %s42_s19, %s42_s19 }
  0x15   :  { %v25_v4 = vmax.f32 %v23_v2, 0.0  ;;  %v26_v5 = vmax.f32 %v24_v3, 0.0  ;;  %p75_p8 = scmp.ne.s32.totalorder %s42_s19, %s74_s0  ;;  %p80_p10 = scmp.lt.s32.totalorder %s74_s0, %s74_s0 }
  0x17   :  { %v27_v6 = vmin.f32 %v25_v4, 6.0  ;;  %v28_v7 = vmin.f32 %v26_v5, 6.0  ;;  %p81_p11 = por %p80_p10, %p79_p9 }
  0x19   :  { %v29_v8 = vmul.f32 0.16666667, %v27_v6  ;;  %v30_v9 = vmul.f32 0.16666667, %v28_v7  ;;  %p82_p12 = pnand %p81_p11, %p75_p8 }
  0x1b   :  { %v31_v10 = vmul.f32 %v29_v8, %v21_v0  ;;  %v32_v11 = vmul.f32 %v30_v9, %v22_v1 }
  0x1d   :  { %33 = vst [vmem:[#allocation5] sm:$0xff] %v31_v10  ;;  %34 = vst [vmem:[#allocation5 + $0x8] sm:$0xff] %v32_v11 }
  0x1e   :  { %85 = shalt.err (!%p82_p12)
}
  0x1f   :  { %s86_s22 = scalar_lea.hbm %s137_s1, 256 }
  0x20   :  { %p87_p13 = scmp.ne.s32.totalorder %s137_s1, %s86_s22  ;;  %p90_p0 = scmp.lt.u32.totalorder %s86_s22, %s137_s1 }
  0x22   :  { %p92_p1 = pnand %p90_p0, %p87_p13 }
  0x24   :  { %95 = shalt.err (!%p92_p1)
}
  0x25   :  { %44 = dma.vmem_to_hbm [thread:$0]  %s42_s19, 256, %s137_s1, [#allocation4]  }
  0x26   :  { %98 = dma.done.wait [#allocation4], 256  }
  0x27   :  { %99 = vsyncadd [#allocation4], 4294967040 }
  0x28   :  { %48 = vsyncpa [#allocation3], 1 }
  0x29   :  { %49 = vsyncpa [#allocation4], 1 }

</bundles_post_ra>
